<compile_context>
chip_gen: v7x
topology: tpu7x:2x2x1
jax: 0.10.0
libtpu: 0.0.40
codegen_flags: <defaults>
</compile_context>

<pallas_src>
import math

import jax
import jax.numpy as jnp
from jax import lax
from jax.experimental import pallas as pl
from jax.experimental.pallas import tpu as pltpu

_MIB = 1024 * 1024
_TARGET_BLOCK_BYTES = 1 * _MIB     # per-output-block budget (pipeline double-buffers it)
_MAX_TOKENS_PER_BLOCK = 1024
_ISSUE_UNROLL = 4                  # manual unroll of the DMA descriptor-issue loop
_GATHER_UNROLL = 8                 # manual unroll of the VMEM gather loop


def _round_up(x, m):
    return (x + m - 1) // m * m


def _vmem_capacity_bytes():
    # 128 MiB on v5e/v6e, 64 MiB per TensorCore on v7x; conservative fallback.
    try:
        return int(pltpu.get_tpu_info().vmem_capacity_bytes)
    except Exception:
        return 64 * _MIB


def _embed_vmem_kernel(ids_ref, table_ref, out_ref):
    # Fast path: whole table resident in VMEM; gather rows with vector loads.
    tn = out_ref.shape[0]
    base = pl.multiple_of(pl.program_id(0) * tn, 8)

    @pl.loop(0, tn // _GATHER_UNROLL)
    def _rows(g):
        r0 = g * _GATHER_UNROLL
        for u in range(_GATHER_UNROLL):   # manual unroll: co-issue sld / vld / vst
            r = r0 + u
            row = ids_ref[base + r]
            out_ref[pl.ds(r, 1), :] = table_ref[pl.ds(row, 1), :]


def _embed_hbm_kernel(ids_ref, table_hbm, out_ref, sem):
    # Bandwidth path: table stays in HBM; DMA each row straight into the
    # pipelined output block (no staging scratch, no extra VMEM copy).
    tn = out_ref.shape[0]
    base = pl.multiple_of(pl.program_id(0) * tn, 8)

    @pl.loop(0, tn // _ISSUE_UNROLL)
    def _start(g):
        r0 = g * _ISSUE_UNROLL
        for u in range(_ISSUE_UNROLL):    # manual unroll of descriptor issue
            r = r0 + u
            row = ids_ref[base + r]
            pltpu.make_async_copy(
                table_hbm.at[pl.ds(row, 1)],
                out_ref.at[pl.ds(r, 1)],
                sem,
            ).start()

    # All tn row copies share one semaphore and are (1, D) of the same dtype,
    # so one (tn, D)-sized wait drains exactly the bytes the tn copies signal.
    # (All scalar id reads happen above, before the wait.)
    pltpu.make_async_copy(table_hbm.at[pl.ds(0, tn)], out_ref, sem).wait()


def embedder_forward(token_ids, table, *, force_hbm=False):
    """nn.Embedding forward: integer ids of any shape -> (*ids.shape, D)."""
    V, D = table.shape
    lead_shape = token_ids.shape
    N = math.prod(lead_shape) if lead_shape else 1
    itemsize = jnp.dtype(table.dtype).itemsize
    table_bytes = V * D * itemsize
    row_bytes = D * itemsize

    # PyTorch raises on out-of-range ids; clamp so a bad id never becomes an
    # unchecked HBM read.
    # TODO(synk): no in-kernel error path for out-of-range ids (PyTorch raises).
    ids = jnp.clip(token_ids.reshape(N).astype(jnp.int32), 0, V - 1)

    # Token tile: ~1 MiB output blocks, multiple of 8 rows, <= 1024 rows,
    # collapsed to a single grid step for tiny N.
    tn = min(_MAX_TOKENS_PER_BLOCK, max(8, _TARGET_BLOCK_BYTES // row_bytes))
    tn = max(8, (tn // 8) * 8)
    tn = min(tn, _round_up(N, 8))
    out_block_bytes = tn * row_bytes

    cap = _vmem_capacity_bytes()
    vmem_ceiling = (cap * 3) // 4          # leave headroom for compiler internals

    # VMEM-resident-table fast path budget: table (possibly double-buffered)
    # + pipelined output blocks + slack.
    fast_need = 2 * table_bytes + 4 * out_block_bytes + 2 * _MIB
    use_vmem_table = (not force_hbm) and (fast_need <= vmem_ceiling)

    if use_vmem_table:
        n_pad = _round_up(N, tn)
        ids_p = jnp.pad(ids, (0, n_pad - N)) if n_pad != N else ids
        vmem_limit = int(min(max(fast_need, 32 * _MIB), vmem_ceiling))
        cost = pl.CostEstimate(
            flops=0, transcendentals=0,
            bytes_accessed=table_bytes + n_pad * row_bytes + n_pad * 4)
        out_flat = pl.pallas_call(
            _embed_vmem_kernel,
            out_shape=jax.ShapeDtypeStruct((n_pad, D), table.dtype),
            grid_spec=pltpu.PrefetchScalarGridSpec(
                num_scalar_prefetch=1,
                grid=(n_pad // tn,),
                in_specs=[pl.BlockSpec((V, D), lambda i, ids_ref: (0, 0))],
                out_specs=pl.BlockSpec((tn, D), lambda i, ids_ref: (i, 0)),
            ),
            compiler_params=pltpu.CompilerParams(
                dimension_semantics=("parallel",),
                vmem_limit_bytes=vmem_limit,
            ),
            cost_estimate=cost,
        )(ids_p, table)
        return out_flat[:N].reshape(*lead_shape, D)

    # --- HBM row-gather path (table too big for VMEM, or forced) ---
    table_g, D_g, dtype_g, pack = table, D, table.dtype, 1
    if itemsize < 4 and (D * itemsize) % 4 == 0:
        # View sub-32-bit rows as packed uint32 words so every row DMA stays on
        # 32-bit granules (no packed-sublane partial writes).
        pack = 4 // itemsize
        D_g = D // pack
        dtype_g = jnp.uint32
        table_g = lax.bitcast_convert_type(table.reshape(V, D_g, pack), jnp.uint32)

    # Keep the aggregate-wait source slice (tn rows of the table) in range.
    tn_h = min(tn, max(8, (V // 8) * 8))
    n_pad = _round_up(N, tn_h)
    ids_p = jnp.pad(ids, (0, n_pad - N)) if n_pad != N else ids
    # TODO(synk): padded tail rows still issue (clamped-to-row-0) gathers; skipping
    # them would need dynamic-size wait descriptors, so the small waste is kept.

    vmem_limit = int(min(max(4 * tn_h * row_bytes + 8 * _MIB, 32 * _MIB), vmem_ceiling))
    cost = pl.CostEstimate(
        flops=0, transcendentals=0,
        bytes_accessed=2 * n_pad * row_bytes + n_pad * 4)
    out_flat = pl.pallas_call(
        _embed_hbm_kernel,
        out_shape=jax.ShapeDtypeStruct((n_pad, D_g), dtype_g),
        grid_spec=pltpu.PrefetchScalarGridSpec(
            num_scalar_prefetch=1,
            grid=(n_pad // tn_h,),
            in_specs=[pl.BlockSpec(memory_space=pl.ANY)],   # table stays in HBM
            out_specs=pl.BlockSpec((tn_h, D_g), lambda i, ids_ref: (i, 0)),
            scratch_shapes=[pltpu.SemaphoreType.DMA(())],
        ),
        compiler_params=pltpu.CompilerParams(
            dimension_semantics=("parallel",),
            vmem_limit_bytes=vmem_limit,
        ),
        cost_estimate=cost,
    )(ids_p, table_g)

    if pack > 1:
        out_flat = lax.bitcast_convert_type(out_flat, table.dtype).reshape(n_pad, D)
    return out_flat[:N].reshape(*lead_shape, D)


if __name__ == "__main__":
    # Small deterministic configuration consistent with the module.
    vocab_size = 32
    embedding_dim = 128
    batch, seq = 2, 8

    key = jax.random.PRNGKey(0)
    k_w, k_ids = jax.random.split(key)

    # nn.Embedding default init: weight ~ N(0, 1), float32.
    emb_weight = jax.random.normal(k_w, (vocab_size, embedding_dim), jnp.float32)
    token_ids = jax.random.randint(k_ids, (batch, seq), 0, vocab_size, jnp.int32)

    ref = jnp.take(emb_weight, token_ids, axis=0)

    # VMEM-resident-table fast path (auto-selected: table is only 16 KiB).
    out_fast = jax.block_until_ready(embedder_forward(token_ids, emb_weight))
    assert out_fast.shape == (batch, seq, embedding_dim)
    assert bool(jnp.array_equal(out_fast, ref))

    # HBM row-gather path (forced) to exercise the DMA code path as well.
    out_hbm = jax.block_until_ready(
        embedder_forward(token_ids, emb_weight, force_hbm=True))
    assert bool(jnp.array_equal(out_hbm, ref))

    print("KERNEL_OK")
</pallas_src>

<mosaic_0001>
module attributes {stable_mosaic.version = 11 : i64} {
  func.func @_embed_vmem_kernel(%arg0: i32, %arg1: memref<16xi32, #tpu.memory_space<smem>>, %arg2: memref<32x128xf32, #tpu.memory_space<vmem>>, %arg3: memref<16x128xf32, #tpu.memory_space<vmem>>) attributes {dimension_semantics = [#tpu.dimension_semantics<parallel>], iteration_bounds = array<i64: 1>, scalar_prefetch = 1 : i64, scratch_operands = 0 : i64, tpu.core_type = #tpu.core_type<tc>, window_params = [{pipeline_mode = #tpu.pipeline_mode<synchronous>, transform_indices = @transform_0, window_bounds = array<i64: 32, 128>}, {transform_indices = @transform_1, window_bounds = array<i64: 16, 128>}]} {
    %c16_i32 = arith.constant 16 : i32
    %0 = arith.muli %arg0, %c16_i32 : i32
    %1 = tpu.assume_multiple %0, 8 : i32
    %c0_i32 = arith.constant 0 : i32
    %c2_i32 = arith.constant 2 : i32
    %2 = arith.addi %c0_i32, %c2_i32 : i32
    %c1_i32 = arith.constant 1 : i32
    scf.for %arg4 = %c0_i32 to %2 step %c1_i32  : i32 {
      %c1_i32_1 = arith.constant 1 : i32
      %3 = arith.muli %arg4, %c1_i32_1 : i32
      %c0_i32_2 = arith.constant 0 : i32
      %4 = arith.addi %c0_i32_2, %3 : i32
      %c8_i32 = arith.constant 8 : i32
      %5 = arith.muli %4, %c8_i32 : i32
      %c0_i32_3 = arith.constant 0 : i32
      %6 = arith.addi %5, %c0_i32_3 : i32
      %7 = arith.addi %1, %6 : i32
      %8 = arith.index_cast %7 : i32 to index
      %9 = memref.load %arg1[%8] : memref<16xi32, #tpu.memory_space<smem>>
      %10 = arith.index_cast %9 : i32 to index
      %c0 = arith.constant 0 : index
      %11 = vector.load %arg2[%10, %c0] : memref<32x128xf32, #tpu.memory_space<vmem>>, vector<1x128xf32>
      %12 = arith.index_cast %6 : i32 to index
      %c0_4 = arith.constant 0 : index
      %13 = vector.load %arg3[%12, %c0_4] : memref<16x128xf32, #tpu.memory_space<vmem>>, vector<1x128xf32>
      tpu.vector_store %arg3[%12, %c0_4], %11 {strides = array<i32>} : memref<16x128xf32, #tpu.memory_space<vmem>>, vector<1x128xf32>,
      %c1_i32_5 = arith.constant 1 : i32
      %14 = arith.addi %5, %c1_i32_5 : i32
      %15 = arith.addi %1, %14 : i32
      %16 = arith.index_cast %15 : i32 to index
      %17 = memref.load %arg1[%16] : memref<16xi32, #tpu.memory_space<smem>>
      %18 = arith.index_cast %17 : i32 to index
      %c0_6 = arith.constant 0 : index
      %19 = vector.load %arg2[%18, %c0_6] : memref<32x128xf32, #tpu.memory_space<vmem>>, vector<1x128xf32>
      %20 = arith.index_cast %14 : i32 to index
      %c0_7 = arith.constant 0 : index
      %21 = vector.load %arg3[%20, %c0_7] : memref<16x128xf32, #tpu.memory_space<vmem>>, vector<1x128xf32>
      tpu.vector_store %arg3[%20, %c0_7], %19 {strides = array<i32>} : memref<16x128xf32, #tpu.memory_space<vmem>>, vector<1x128xf32>,
      %c2_i32_8 = arith.constant 2 : i32
      %22 = arith.addi %5, %c2_i32_8 : i32
      %23 = arith.addi %1, %22 : i32
      %24 = arith.index_cast %23 : i32 to index
      %25 = memref.load %arg1[%24] : memref<16xi32, #tpu.memory_space<smem>>
      %26 = arith.index_cast %25 : i32 to index
      %c0_9 = arith.constant 0 : index
      %27 = vector.load %arg2[%26, %c0_9] : memref<32x128xf32, #tpu.memory_space<vmem>>, vector<1x128xf32>
      %28 = arith.index_cast %22 : i32 to index
      %c0_10 = arith.constant 0 : index
      %29 = vector.load %arg3[%28, %c0_10] : memref<16x128xf32, #tpu.memory_space<vmem>>, vector<1x128xf32>
      tpu.vector_store %arg3[%28, %c0_10], %27 {strides = array<i32>} : memref<16x128xf32, #tpu.memory_space<vmem>>, vector<1x128xf32>,
      %c3_i32 = arith.constant 3 : i32
      %30 = arith.addi %5, %c3_i32 : i32
      %31 = arith.addi %1, %30 : i32
      %32 = arith.index_cast %31 : i32 to index
      %33 = memref.load %arg1[%32] : memref<16xi32, #tpu.memory_space<smem>>
      %34 = arith.index_cast %33 : i32 to index
      %c0_11 = arith.constant 0 : index
      %35 = vector.load %arg2[%34, %c0_11] : memref<32x128xf32, #tpu.memory_space<vmem>>, vector<1x128xf32>
      %36 = arith.index_cast %30 : i32 to index
      %c0_12 = arith.constant 0 : index
      %37 = vector.load %arg3[%36, %c0_12] : memref<16x128xf32, #tpu.memory_space<vmem>>, vector<1x128xf32>
      tpu.vector_store %arg3[%36, %c0_12], %35 {strides = array<i32>} : memref<16x128xf32, #tpu.memory_space<vmem>>, vector<1x128xf32>,
      %c4_i32 = arith.constant 4 : i32
      %38 = arith.addi %5, %c4_i32 : i32
      %39 = arith.addi %1, %38 : i32
      %40 = arith.index_cast %39 : i32 to index
      %41 = memref.load %arg1[%40] : memref<16xi32, #tpu.memory_space<smem>>
      %42 = arith.index_cast %41 : i32 to index
      %c0_13 = arith.constant 0 : index
      %43 = vector.load %arg2[%42, %c0_13] : memref<32x128xf32, #tpu.memory_space<vmem>>, vector<1x128xf32>
      %44 = arith.index_cast %38 : i32 to index
      %c0_14 = arith.constant 0 : index
      %45 = vector.load %arg3[%44, %c0_14] : memref<16x128xf32, #tpu.memory_space<vmem>>, vector<1x128xf32>
      tpu.vector_store %arg3[%44, %c0_14], %43 {strides = array<i32>} : memref<16x128xf32, #tpu.memory_space<vmem>>, vector<1x128xf32>,
      %c5_i32 = arith.constant 5 : i32
      %46 = arith.addi %5, %c5_i32 : i32
      %47 = arith.addi %1, %46 : i32
      %48 = arith.index_cast %47 : i32 to index
      %49 = memref.load %arg1[%48] : memref<16xi32, #tpu.memory_space<smem>>
      %50 = arith.index_cast %49 : i32 to index
      %c0_15 = arith.constant 0 : index
      %51 = vector.load %arg2[%50, %c0_15] : memref<32x128xf32, #tpu.memory_space<vmem>>, vector<1x128xf32>
      %52 = arith.index_cast %46 : i32 to index
      %c0_16 = arith.constant 0 : index
      %53 = vector.load %arg3[%52, %c0_16] : memref<16x128xf32, #tpu.memory_space<vmem>>, vector<1x128xf32>
      tpu.vector_store %arg3[%52, %c0_16], %51 {strides = array<i32>} : memref<16x128xf32, #tpu.memory_space<vmem>>, vector<1x128xf32>,
      %c6_i32 = arith.constant 6 : i32
      %54 = arith.addi %5, %c6_i32 : i32
      %55 = arith.addi %1, %54 : i32
      %56 = arith.index_cast %55 : i32 to index
      %57 = memref.load %arg1[%56] : memref<16xi32, #tpu.memory_space<smem>>
      %58 = arith.index_cast %57 : i32 to index
      %c0_17 = arith.constant 0 : index
      %59 = vector.load %arg2[%58, %c0_17] : memref<32x128xf32, #tpu.memory_space<vmem>>, vector<1x128xf32>
      %60 = arith.index_cast %54 : i32 to index
      %c0_18 = arith.constant 0 : index
      %61 = vector.load %arg3[%60, %c0_18] : memref<16x128xf32, #tpu.memory_space<vmem>>, vector<1x128xf32>
      tpu.vector_store %arg3[%60, %c0_18], %59 {strides = array<i32>} : memref<16x128xf32, #tpu.memory_space<vmem>>, vector<1x128xf32>,
      %c7_i32 = arith.constant 7 : i32
      %62 = arith.addi %5, %c7_i32 : i32
      %63 = arith.addi %1, %62 : i32
      %64 = arith.index_cast %63 : i32 to index
      %65 = memref.load %arg1[%64] : memref<16xi32, #tpu.memory_space<smem>>
      %66 = arith.index_cast %65 : i32 to index
      %c0_19 = arith.constant 0 : index
      %67 = vector.load %arg2[%66, %c0_19] : memref<32x128xf32, #tpu.memory_space<vmem>>, vector<1x128xf32>
      %68 = arith.index_cast %62 : i32 to index
      %c0_20 = arith.constant 0 : index
      %69 = vector.load %arg3[%68, %c0_20] : memref<16x128xf32, #tpu.memory_space<vmem>>, vector<1x128xf32>
      tpu.vector_store %arg3[%68, %c0_20], %67 {strides = array<i32>} : memref<16x128xf32, #tpu.memory_space<vmem>>, vector<1x128xf32>,
    }
    %c2_i32_0 = arith.constant 2 : i32
    return
  }
  func.func @transform_0(%arg0: i32, %arg1: memref<16xi32, #tpu.memory_space<smem>>) -> (i32, i32) {
    %c0_i32 = arith.constant 0 : i32
    %c0_i32_0 = arith.constant 0 : i32
    %c0_i32_1 = arith.constant 0 : i32
    return %c0_i32, %c0_i32_0 : i32, i32
  }
  func.func @transform_1(%arg0: i32, %arg1: memref<16xi32, #tpu.memory_space<smem>>) -> (i32, i32) {
    %c0_i32 = arith.constant 0 : i32
    %c0_i32_0 = arith.constant 0 : i32
    return %arg0, %c0_i32 : i32, i32
  }
}

</mosaic_0001>

<bundles_post_ra>
// kernel: tpu_custom_call.1
= control target key start
LH: loop header
LB: loop body
LE: loop exit
PB: predicated region body
PF: predicated region fallthrough
CT: control target
= control target key end

     0   :  { %s311_s0 = inlined_call_operand.hbm [shape: s32[16], index: 0, kind: input, shape index: {}]   ;;  %s312_s1 = inlined_call_operand.hbm [shape: f32[32,128], index: 1, kind: input, shape index: {}]   ;;  %s313_s2 = inlined_call_operand.hbm [shape: f32[16,128], index: 2, kind: output, shape index: {}]  }
   0x1   :  { %s172_s11 = scalar_lea.hbm %s311_s0, 16 }
   0x2   :  { %p173_p0 = scmp.ne.s32.totalorder %s311_s0, %s172_s11  ;;  %p176_p1 = scmp.lt.u32.totalorder %s172_s11, %s311_s0 }
   0x4   :  { %p178_p2 = pnand %p176_p1, %p173_p0 }
   0x6   :  { %181 = shalt.err (!%p178_p2)  }
   0x7   :  { %s240_s16 = smov [#allocation3]  }
   0x8   :  { %8 = dma.hbm_to_smem %s311_s0, 16, %s240_s16, [#allocation2] }
   0x9   :  { %230 = dma.done.wait [#allocation2], 16 }
   0xa   :  { %231 = vsyncadd [#allocation2], 4294967280 }
   0xb   :  { %10 = sfence }
   0xc   :  { %11 = vsyncpa [#allocation5], 0 }
   0xd   :  { %12 = vsyncpa [#allocation6], 0  ;;  %s241_s19 = smov [#allocation4]   ;;  %s182_s23 = scalar_lea.hbm %s312_s1, 512 }
   0xe   :  { %s18_s20 = sshll.u32 %s241_s19, 4  ;;  %p183_p3 = scmp.ne.s32.totalorder %s312_s1, %s182_s23  ;;  %s19_s20 = int_to_ptr.vmem [resolvable:$true] %s18_s20 }
   0xf   :  { %p186_p4 = scmp.lt.u32.totalorder %s182_s23, %s312_s1 }
  0x11   :  { %p188_p5 = pnand %p186_p4, %p183_p3 }
  0x13   :  { %191 = shalt.err (!%p188_p5)
}
  0x14   :  { %s192_s0 = scalar_lea.vmem %s19_s20, 512  ;;  %p197_p7 = scmp.lt.s32.totalorder %s19_s20, %s19_s20 }
  0x15   :  { %p193_p6 = scmp.ne.s32.totalorder %s19_s20, %s192_s0  ;;  %p198_p8 = scmp.lt.s32.totalorder %s192_s0, %s192_s0 }
  0x17   :  { %p199_p9 = por %p198_p8, %p197_p7 }
  0x19   :  { %p200_p10 = pnand %p199_p9, %p193_p6 }
  0x1b   :  { %203 = shalt.err (!%p200_p10)
}
  0x1c   :  { %s242_s28 = smov 128   ;;  %s243_s29 = smov 8  }
  0x1d   :  { %24 = dma.hbm_to_vmem [thread:$0]  %s312_s1, 512, %s19_s20, [#allocation5], %s242_s28, %s242_s28, %s243_s29  }
  0x1e   :  { %232 = dma.done.wait [#allocation5], 512  }
  0x1f   :  { %233 = vsyncadd [#allocation5], 4294966784  ;;  %s287_s4 = smov 0  }
  0x20 LB: > { %s144_s5 = sshll.u32 %s238_s4, 3  ;;  %s34_s4 = sadd.s32 1, %s238_s4   ;;  %s238_s4 = sphi %s287_s4, %s34_s4  }
  0x21   : > { %s37_s6 = sld [smem:[#allocation3 + %s144_s5]]  ;;  %s42_s7 = sadd.s32 1, %s144_s5 }
  0x22   : > { %s49_s8 = sadd.s32 2, %s144_s5  ;;  %s44_s9 = sld [smem:[#allocation3 + %s42_s7]] }
  0x23   : > { %s51_s10 = sld [smem:[#allocation3 + %s49_s8]]  ;;  %s56_s11 = sadd.s32 3, %s144_s5 }
  0x24   : > { %s63_s12 = sadd.s32 4, %s144_s5  ;;  %s58_s13 = sld [smem:[#allocation3 + %s56_s11]] }
  0x25   : > { %s65_s1 = sld [smem:[#allocation3 + %s63_s12]]  ;;  %s70_s14 = sadd.s32 5, %s144_s5 }
  0x26   : > { %s77_s15 = sadd.s32 6, %s144_s5  ;;  %s72_s16 = sld [smem:[#allocation3 + %s70_s14]] }
  0x27   : > { %s38_s17 = scalar_lea.vmem [#allocation4], %s37_s6  ;;  %s79_s18 = sld [smem:[#allocation3 + %s77_s15]] }
  0x28   : > { %v39_v0 = vld [vmem:[%s38_s17] sm:$0x1]  ;;  %s84_s19 = sadd.s32 7, %s144_s5  ;;  %s40_s20 = scalar_lea.vmem [#allocation7], %s144_s5 }
  0x29   : > { %41 = vst [vmem:[%s40_s20] sm:$0x1] %v39_v0  ;;  %s45_s21 = scalar_lea.vmem [#allocation4], %s44_s9  ;;  %s52_s22 = scalar_lea.vmem [#allocation4], %s51_s10 }
  0x2a   : > { %v46_v1 = vld [vmem:[%s45_s21] sm:$0x1]  ;;  %s86_s23 = sld [smem:[#allocation3 + %s84_s19]]  ;;  %s59_s24 = scalar_lea.vmem [#allocation4], %s58_s13 }
  0x2b   : > { %v53_v2 = vld [vmem:[%s52_s22] sm:$0x1]  ;;  %146 = vst [vmem:[%s40_s20 + $0x1] sm:$0x1] %v46_v1  ;;  %s66_s25 = scalar_lea.vmem [#allocation4], %s65_s1  ;;  %p31_p11 = scmp.ge.s32.totalorder %s34_s4, 2  }
  0x2c   : > { %148 = vst [vmem:[%s40_s20 + $0x2] sm:$0x1] %v53_v2  ;;  %v60_v3 = vld [vmem:[%s59_s24] sm:$0x1]  ;;  %s73_s26 = scalar_lea.vmem [#allocation4], %s72_s16  ;;  %s244_s30 = smov (%p31_p11), [#allocation7]  }
  0x2d   : > { %v67_v4 = vld [vmem:[%s66_s25] sm:$0x1]  ;;  %150 = vst [vmem:[%s40_s20 + $0x3] sm:$0x1] %v60_v3  ;;  %s80_s27 = scalar_lea.vmem [#allocation4], %s79_s18  ;;  %33 = sbr.rel (!%p31_p11) target bundleno = 32 (0x20), region = 51 }
  0x2e   : > { %152 = vst [vmem:[%s40_s20 + $0x4] sm:$0x1] %v67_v4  ;;  %v74_v5 = vld [vmem:[%s73_s26] sm:$0x1]  ;;  %s96_s3 = sshll.u32 (%p31_p11), %s244_s30, 4  ;;  %s97_s3 = int_to_ptr.vmem [resolvable:$true] %s96_s3 }
  0x2f   : > { %154 = vst [vmem:[%s40_s20 + $0x5] sm:$0x1] %v74_v5  ;;  %v81_v6 = vld [vmem:[%s80_s27] sm:$0x1]  ;;  %s204_s5 = scalar_lea.vmem (%p31_p11), %s97_s3, 256  ;;  %p209_p13 = scmp.lt.s32.totalorder (%p31_p11), %s97_s3, %s97_s3 }
  0x30   : > { %156 = vst [vmem:[%s40_s20 + $0x6] sm:$0x1] %v81_v6  ;;  %s87_s0 = scalar_lea.vmem [#allocation4], %s86_s23  ;;  %p205_p12 = scmp.ne.s32.totalorder (%p31_p11), %s97_s3, %s204_s5 }
  0x31   : > { %v88_v7 = vld [vmem:[%s87_s0] sm:$0x1]  ;;  %p210_p0 = scmp.lt.s32.totalorder (%p31_p11), %s204_s5, %s204_s5 }
  0x32   : > { %158 = vst [vmem:[%s40_s20 + $0x7] sm:$0x1] %v88_v7 }
  0x33   :  { %p211_p1 = por (%p31_p11), %p210_p0, %p209_p13 }
  0x35   :  { %p212_p2 = pnand %p211_p1, %p205_p12 }
  0x37   :  { %215 = shalt.err (!%p212_p2)
}
  0x38   :  { %s216_s8 = scalar_lea.hbm %s313_s2, 256 }
  0x39   :  { %p217_p3 = scmp.ne.s32.totalorder %s313_s2, %s216_s8  ;;  %p220_p4 = scmp.lt.u32.totalorder %s216_s8, %s313_s2 }
  0x3b   :  { %p222_p5 = pnand %p220_p4, %p217_p3 }
  0x3d   :  { %225 = shalt.err (!%p222_p5)
}
  0x3e   :  { %102 = dma.vmem_to_hbm [thread:$0]  %s97_s3, 256, %s313_s2, [#allocation6], %s242_s28, %s242_s28, %s243_s29  }
  0x3f   :  { %234 = dma.done.wait [#allocation6], 256  }
  0x40   :  { %235 = vsyncadd [#allocation6], 4294967040 }
  0x41   :  { %106 = vsyncpa [#allocation5], 1 }
  0x42   :  { %107 = vsyncpa [#allocation6], 1 }

</bundles_post_ra>
